<compile_context>
chip_gen: v6e
topology: v6e:2x2x1
jax: 0.10.0
libtpu: 0.0.40
codegen_flags: <defaults>
</compile_context>

<pallas_src>
import jax
import jax.numpy as jnp
from jax.experimental import pallas as pl
from jax.experimental.pallas import tpu as pltpu


def _num_pad_from_symb_pad(pad, ksize):
    if pad == "same":
        p = int((ksize - 1) / 2)
        return (p, p)
    if pad == "valid":
        return (0, 0)
    if isinstance(pad, tuple):
        return pad
    raise ValueError(f"Padding is unknown--Pad: {pad}")


def _make_smap_kernel(out_id_comp: int, out_state: int, rf: int, wp: int, m_out: int):
    """Fused conv (rf*rf shifted matmuls) + bias + grouped log-softmax.

    Refs:
      w_ref: (rf*rf, Cout, Cin)  bf16, VMEM-resident across grid steps
      b_ref: (Cout, 1)           f32,  VMEM-resident (conv-channel order)
      x_ref: (1, Cin, flat_len)  bf16, one padded image, flattened spatial
      o_ref: (1, Cout, m_out)    x.dtype, dense stride-1 output in padded frame
    """
    c_out = out_id_comp * out_state
    taps = rf * rf

    def kernel(w_ref, b_ref, x_ref, o_ref):
        x = x_ref[0]                                             # (Cin, flat_len)
        acc = jnp.zeros((c_out, m_out), jnp.float32)
        for t in range(taps):                                    # static unroll (rf*rf small)
            i, j = divmod(t, rf)
            off = i * wp + j                                     # static lane offset
            acc = acc + jnp.dot(w_ref[t], x[:, off:off + m_out],
                                preferred_element_type=jnp.float32)
        acc = acc + b_ref[...]                                   # (Cout,1) bcast over lanes
        # grouped log-softmax over out_state within each out_id_comp group
        grp = acc.reshape(out_id_comp, out_state, m_out)
        mx = jnp.max(grp, axis=1, keepdims=True)
        lse = mx + jnp.log(jnp.sum(jnp.exp(grp - mx), axis=1, keepdims=True))
        out = (grp - lse).reshape(c_out, m_out)
        o_ref[0] = out.astype(o_ref.dtype)

    return kernel


def smap_forward(x, weight, bias, *, out_state, out_id_comp, in_state,
                 in_id_comp, rec_field, stride, pad,
                 compute_dtype=jnp.bfloat16):
    """SMAP.forward.  x: (N, in_state, H, W, in_id_comp)."""
    n, s_in, h, w_sp, ic = x.shape
    assert s_in == in_state and ic == in_id_comp
    rf = rec_field
    sh = sw = int(stride)
    ph, pw = _num_pad_from_symb_pad(pad, rf)
    c_in = in_state * in_id_comp
    c_out = out_state * out_id_comp
    taps = rf * rf
    out_dtype = x.dtype

    hp, wp = h + 2 * ph, w_sp + 2 * pw
    ho_d, wo_d = hp - rf + 1, wp - rf + 1        # dense (stride-1) conv output
    assert ho_d > 0 and wo_d > 0
    m_out = ho_d * wp                            # flat padded-frame output span
    flat_len = hp * wp + (rf - 1)                # room for the largest tap offset

    # ---- parameter preprocessing (tiny, plain JAX) -------------------------
    w_ls = jax.nn.log_softmax(weight.astype(jnp.float32), axis=1)   # (Cout,is,ic,rf,rf)
    # per-tap weight matrices: (rf*rf, Cout, Cin), Cin index = s*in_id_comp + ic
    w_taps = jnp.transpose(w_ls, (3, 4, 0, 1, 2)).reshape(taps, c_out, c_in)
    w_taps = w_taps.astype(compute_dtype)
    # bias in conv-channel order c = oic*out_state + os, value bias[os, oic]
    b_conv = (bias.astype(jnp.float32)
              .reshape(out_state, out_id_comp).T.reshape(c_out, 1))

    # ---- input: NCHW + spatial zero-pad + flatten (NO rf^2 im2col copy) ----
    x_nchw = jnp.transpose(x, (0, 1, 4, 2, 3)).reshape(n, c_in, h, w_sp)
    xpad = jnp.pad(x_nchw, ((0, 0), (0, 0), (ph, ph), (pw, pw)))
    x_flat = xpad.reshape(n, c_in, hp * wp)
    x_flat = jnp.pad(x_flat, ((0, 0), (0, 0), (0, flat_len - hp * wp)))
    x_flat = x_flat.astype(compute_dtype)

    # ---- fused Pallas kernel -----------------------------------------------
    grid_spec = pl.GridSpec(
        grid=(n,),
        in_specs=[
            pl.BlockSpec((taps, c_out, c_in), lambda b: (0, 0, 0)),  # weights: resident
            pl.BlockSpec((c_out, 1), lambda b: (0, 0)),              # bias: resident
            pl.BlockSpec((1, c_in, flat_len), lambda b: (b, 0, 0)),  # one image / step
        ],
        out_specs=pl.BlockSpec((1, c_out, m_out), lambda b: (b, 0, 0)),
    )
    in_isz = jnp.dtype(compute_dtype).itemsize
    out_isz = jnp.dtype(out_dtype).itemsize
    cost = pl.CostEstimate(
        flops=int(2 * n * taps * c_out * c_in * m_out),
        transcendentals=int(n * (c_out + out_id_comp) * m_out),
        bytes_accessed=int(n * c_in * flat_len * in_isz
                           + taps * c_out * c_in * in_isz
                           + c_out * 4
                           + n * c_out * m_out * out_isz),
    )
    out = pl.pallas_call(
        _make_smap_kernel(out_id_comp, out_state, rf, wp, m_out),
        out_shape=jax.ShapeDtypeStruct((n, c_out, m_out), out_dtype),
        grid_spec=grid_spec,
        compiler_params=pltpu.CompilerParams(
            dimension_semantics=("parallel",)),
        cost_estimate=cost,
    )(w_taps, b_conv, x_flat)

    # ---- back to the module's (N, out_state, Ho, Wo, out_id_comp) layout ---
    y = out.reshape(n, out_id_comp, out_state, ho_d, wp)[:, :, :, :, :wo_d]
    y = y[:, :, :, ::sh, ::sw]                   # stride subsample (post log-softmax is valid)
    y = jnp.transpose(y, (0, 2, 3, 4, 1))
    return y


def smap_ref(x, weight, bias, out_state, out_id_comp, in_state, in_id_comp,
             rec_field, stride, pad, operand_dtype=None):
    """Pure-JAX reference mirroring the PyTorch forward.

    If operand_dtype is given, the conv operands are quantized to that dtype
    (accumulation in f32) so the kernel's bf16 path can be checked tightly.
    """
    n, _, h, wd, _ = x.shape
    rf = rec_field
    ph, pw = _num_pad_from_symb_pad(pad, rf)
    c_in = in_state * in_id_comp
    c_out = out_state * out_id_comp
    kernel = jax.nn.log_softmax(weight.astype(jnp.float32), axis=1).reshape(c_out, c_in, rf, rf)
    xin = jnp.transpose(x.astype(jnp.float32), (0, 1, 4, 2, 3)).reshape(n, c_in, h, wd)
    if operand_dtype is not None:
        kernel = kernel.astype(operand_dtype)
        xin = xin.astype(operand_dtype)
    y = jax.lax.conv_general_dilated(
        xin, kernel, window_strides=(stride, stride),
        padding=((ph, ph), (pw, pw)),
        dimension_numbers=("NCHW", "OIHW", "NCHW"),
        preferred_element_type=jnp.float32,
        precision=jax.lax.Precision.HIGHEST)
    ho, wo = y.shape[2], y.shape[3]
    y = y.reshape(n, out_id_comp, out_state, ho, wo)
    y = jnp.transpose(y, (0, 2, 3, 4, 1))
    y = y + bias.astype(jnp.float32).reshape(1, out_state, 1, 1, out_id_comp)
    return jax.nn.log_softmax(y, axis=1)


if __name__ == "__main__":
    key = jax.random.PRNGKey(0)
    # Small shapes consistent with the module's conv-style usage.
    N, in_state, in_id_comp = 2, 4, 2
    out_state, out_id_comp = 4, 2
    H = W = 16
    rec_field, stride, pad, init_coef = 3, 1, "same", 1.0

    k1, k2, k3 = jax.random.split(key, 3)
    # weight init per module: exponential, normalized over in_state, log * init_coef
    u = jax.random.uniform(k1, (out_state * out_id_comp, in_state, in_id_comp,
                                rec_field, rec_field), minval=1e-6, maxval=1.0)
    wexp = -jnp.log(u)
    wexp = wexp / jnp.sum(wexp, axis=1, keepdims=True)
    weight = jnp.log(wexp) * init_coef
    bias = 0.1 * jax.random.normal(k2, (out_state * out_id_comp,), dtype=jnp.float32)
    x = jax.random.normal(k3, (N, in_state, H, W, in_id_comp), dtype=jnp.float32)

    out = smap_forward(x, weight, bias, out_state=out_state,
                       out_id_comp=out_id_comp, in_state=in_state,
                       in_id_comp=in_id_comp, rec_field=rec_field,
                       stride=stride, pad=pad,
                       compute_dtype=jnp.bfloat16)
    out = jax.block_until_ready(out)
    assert out.shape == (N, out_state, H, W, out_id_comp), out.shape

    # Primary check: against a reference using identically bf16-quantized
    # operands (f32 accumulation) -> tight tolerance on kernel math itself.
    ref_q = smap_ref(x, weight, bias, out_state, out_id_comp, in_state,
                     in_id_comp, rec_field, stride, pad,
                     operand_dtype=jnp.bfloat16)
    assert jnp.allclose(out.astype(jnp.float32), ref_q, atol=5e-3, rtol=1e-3), \
        f"mismatch vs bf16-operand reference, max abs diff={jnp.max(jnp.abs(out - ref_q))}"

    # Sanity check: against the full-f32 module semantics (loose tolerance only
    # accounts for bf16 operand quantization).
    ref_f32 = smap_ref(x, weight, bias, out_state, out_id_comp, in_state,
                       in_id_comp, rec_field, stride, pad)
    assert jnp.allclose(out.astype(jnp.float32), ref_f32, atol=0.5), \
        f"mismatch vs f32 reference, max abs diff={jnp.max(jnp.abs(out - ref_f32))}"

    print("KERNEL_OK")
</pallas_src>

<mosaic_0001>
module attributes {stable_mosaic.version = 11 : i64} {
  func.func @kernel(%arg0: i32, %arg1: memref<9x8x8xbf16, #tpu.memory_space<vmem>>, %arg2: memref<8x1xf32, #tpu.memory_space<vmem>>, %arg3: memref<1x8x326xbf16, #tpu.memory_space<vmem>>, %arg4: memref<1x8x288xf32, #tpu.memory_space<vmem>>) attributes {dimension_semantics = [#tpu.dimension_semantics<parallel>], iteration_bounds = array<i64: 2>, scalar_prefetch = 0 : i64, scratch_operands = 0 : i64, tpu.core_type = #tpu.core_type<tc>, window_params = [{pipeline_mode = #tpu.pipeline_mode<synchronous>, transform_indices = @transform_0, window_bounds = array<i64: 9, 8, 8>}, {pipeline_mode = #tpu.pipeline_mode<synchronous>, transform_indices = @transform_1, window_bounds = array<i64: 8, 1>}, {transform_indices = @transform_2, window_bounds = array<i64: 1, 8, 326>}, {transform_indices = @transform_3, window_bounds = array<i64: 1, 8, 288>}]} {
    %c0 = arith.constant 0 : index
    %c0_0 = arith.constant 0 : index
    %c0_1 = arith.constant 0 : index
    %0 = vector.load %arg3[%c0, %c0_0, %c0_1] : memref<1x8x326xbf16, #tpu.memory_space<vmem>>, vector<1x8x326xbf16>
    %1 = vector.shape_cast %0 : vector<1x8x326xbf16> to vector<8x326xbf16>
    %cst = arith.constant 0.000000e+00 : f32
    %2 = vector.broadcast %cst : f32 to vector<8x288xf32>
    %c0_2 = arith.constant 0 : index
    %c0_3 = arith.constant 0 : index
    %c0_4 = arith.constant 0 : index
    %3 = vector.load %arg1[%c0_2, %c0_3, %c0_4] : memref<9x8x8xbf16, #tpu.memory_space<vmem>>, vector<1x8x8xbf16>
    %4 = vector.shape_cast %3 : vector<1x8x8xbf16> to vector<8x8xbf16>
    %5 = vector.extract_strided_slice %1 {offsets = [0, 0], sizes = [8, 288], strides = [1, 1]} : vector<8x326xbf16> to vector<8x288xbf16>
    %cst_5 = arith.constant dense<0.000000e+00> : vector<8x288xf32>
    %6 = tpu.matmul %4, %5, %cst_5 {dimension_numbers = #tpu.dot_dimension_numbers<[1], [0], [0], [1], [0, 0, 1, 1], [], []>} : vector<8x8xbf16>, vector<8x288xbf16>, vector<8x288xf32> -> vector<8x288xf32>
    %7 = arith.addf %2, %6 : vector<8x288xf32>
    %c1 = arith.constant 1 : index
    %c0_6 = arith.constant 0 : index
    %c0_7 = arith.constant 0 : index
    %8 = vector.load %arg1[%c1, %c0_6, %c0_7] : memref<9x8x8xbf16, #tpu.memory_space<vmem>>, vector<1x8x8xbf16>
    %9 = vector.shape_cast %8 : vector<1x8x8xbf16> to vector<8x8xbf16>
    %10 = vector.extract_strided_slice %1 {offsets = [0, 1], sizes = [8, 288], strides = [1, 1]} : vector<8x326xbf16> to vector<8x288xbf16>
    %cst_8 = arith.constant dense<0.000000e+00> : vector<8x288xf32>
    %11 = tpu.matmul %9, %10, %cst_8 {dimension_numbers = #tpu.dot_dimension_numbers<[1], [0], [0], [1], [0, 0, 1, 1], [], []>} : vector<8x8xbf16>, vector<8x288xbf16>, vector<8x288xf32> -> vector<8x288xf32>
    %12 = arith.addf %7, %11 : vector<8x288xf32>
    %c2 = arith.constant 2 : index
    %c0_9 = arith.constant 0 : index
    %c0_10 = arith.constant 0 : index
    %13 = vector.load %arg1[%c2, %c0_9, %c0_10] : memref<9x8x8xbf16, #tpu.memory_space<vmem>>, vector<1x8x8xbf16>
    %14 = vector.shape_cast %13 : vector<1x8x8xbf16> to vector<8x8xbf16>
    %15 = vector.extract_strided_slice %1 {offsets = [0, 2], sizes = [8, 288], strides = [1, 1]} : vector<8x326xbf16> to vector<8x288xbf16>
    %cst_11 = arith.constant dense<0.000000e+00> : vector<8x288xf32>
    %16 = tpu.matmul %14, %15, %cst_11 {dimension_numbers = #tpu.dot_dimension_numbers<[1], [0], [0], [1], [0, 0, 1, 1], [], []>} : vector<8x8xbf16>, vector<8x288xbf16>, vector<8x288xf32> -> vector<8x288xf32>
    %17 = arith.addf %12, %16 : vector<8x288xf32>
    %c3 = arith.constant 3 : index
    %c0_12 = arith.constant 0 : index
    %c0_13 = arith.constant 0 : index
    %18 = vector.load %arg1[%c3, %c0_12, %c0_13] : memref<9x8x8xbf16, #tpu.memory_space<vmem>>, vector<1x8x8xbf16>
    %19 = vector.shape_cast %18 : vector<1x8x8xbf16> to vector<8x8xbf16>
    %20 = vector.extract_strided_slice %1 {offsets = [0, 18], sizes = [8, 288], strides = [1, 1]} : vector<8x326xbf16> to vector<8x288xbf16>
    %cst_14 = arith.constant dense<0.000000e+00> : vector<8x288xf32>
    %21 = tpu.matmul %19, %20, %cst_14 {dimension_numbers = #tpu.dot_dimension_numbers<[1], [0], [0], [1], [0, 0, 1, 1], [], []>} : vector<8x8xbf16>, vector<8x288xbf16>, vector<8x288xf32> -> vector<8x288xf32>
    %22 = arith.addf %17, %21 : vector<8x288xf32>
    %c4 = arith.constant 4 : index
    %c0_15 = arith.constant 0 : index
    %c0_16 = arith.constant 0 : index
    %23 = vector.load %arg1[%c4, %c0_15, %c0_16] : memref<9x8x8xbf16, #tpu.memory_space<vmem>>, vector<1x8x8xbf16>
    %24 = vector.shape_cast %23 : vector<1x8x8xbf16> to vector<8x8xbf16>
    %25 = vector.extract_strided_slice %1 {offsets = [0, 19], sizes = [8, 288], strides = [1, 1]} : vector<8x326xbf16> to vector<8x288xbf16>
    %cst_17 = arith.constant dense<0.000000e+00> : vector<8x288xf32>
    %26 = tpu.matmul %24, %25, %cst_17 {dimension_numbers = #tpu.dot_dimension_numbers<[1], [0], [0], [1], [0, 0, 1, 1], [], []>} : vector<8x8xbf16>, vector<8x288xbf16>, vector<8x288xf32> -> vector<8x288xf32>
    %27 = arith.addf %22, %26 : vector<8x288xf32>
    %c5 = arith.constant 5 : index
    %c0_18 = arith.constant 0 : index
    %c0_19 = arith.constant 0 : index
    %28 = vector.load %arg1[%c5, %c0_18, %c0_19] : memref<9x8x8xbf16, #tpu.memory_space<vmem>>, vector<1x8x8xbf16>
    %29 = vector.shape_cast %28 : vector<1x8x8xbf16> to vector<8x8xbf16>
    %30 = vector.extract_strided_slice %1 {offsets = [0, 20], sizes = [8, 288], strides = [1, 1]} : vector<8x326xbf16> to vector<8x288xbf16>
    %cst_20 = arith.constant dense<0.000000e+00> : vector<8x288xf32>
    %31 = tpu.matmul %29, %30, %cst_20 {dimension_numbers = #tpu.dot_dimension_numbers<[1], [0], [0], [1], [0, 0, 1, 1], [], []>} : vector<8x8xbf16>, vector<8x288xbf16>, vector<8x288xf32> -> vector<8x288xf32>
    %32 = arith.addf %27, %31 : vector<8x288xf32>
    %c6 = arith.constant 6 : index
    %c0_21 = arith.constant 0 : index
    %c0_22 = arith.constant 0 : index
    %33 = vector.load %arg1[%c6, %c0_21, %c0_22] : memref<9x8x8xbf16, #tpu.memory_space<vmem>>, vector<1x8x8xbf16>
    %34 = vector.shape_cast %33 : vector<1x8x8xbf16> to vector<8x8xbf16>
    %35 = vector.extract_strided_slice %1 {offsets = [0, 36], sizes = [8, 288], strides = [1, 1]} : vector<8x326xbf16> to vector<8x288xbf16>
    %cst_23 = arith.constant dense<0.000000e+00> : vector<8x288xf32>
    %36 = tpu.matmul %34, %35, %cst_23 {dimension_numbers = #tpu.dot_dimension_numbers<[1], [0], [0], [1], [0, 0, 1, 1], [], []>} : vector<8x8xbf16>, vector<8x288xbf16>, vector<8x288xf32> -> vector<8x288xf32>
    %37 = arith.addf %32, %36 : vector<8x288xf32>
    %c7 = arith.constant 7 : index
    %c0_24 = arith.constant 0 : index
    %c0_25 = arith.constant 0 : index
    %38 = vector.load %arg1[%c7, %c0_24, %c0_25] : memref<9x8x8xbf16, #tpu.memory_space<vmem>>, vector<1x8x8xbf16>
    %39 = vector.shape_cast %38 : vector<1x8x8xbf16> to vector<8x8xbf16>
    %40 = vector.extract_strided_slice %1 {offsets = [0, 37], sizes = [8, 288], strides = [1, 1]} : vector<8x326xbf16> to vector<8x288xbf16>
    %cst_26 = arith.constant dense<0.000000e+00> : vector<8x288xf32>
    %41 = tpu.matmul %39, %40, %cst_26 {dimension_numbers = #tpu.dot_dimension_numbers<[1], [0], [0], [1], [0, 0, 1, 1], [], []>} : vector<8x8xbf16>, vector<8x288xbf16>, vector<8x288xf32> -> vector<8x288xf32>
    %42 = arith.addf %37, %41 : vector<8x288xf32>
    %c8 = arith.constant 8 : index
    %c0_27 = arith.constant 0 : index
    %c0_28 = arith.constant 0 : index
    %43 = vector.load %arg1[%c8, %c0_27, %c0_28] : memref<9x8x8xbf16, #tpu.memory_space<vmem>>, vector<1x8x8xbf16>
    %44 = vector.shape_cast %43 : vector<1x8x8xbf16> to vector<8x8xbf16>
    %45 = vector.extract_strided_slice %1 {offsets = [0, 38], sizes = [8, 288], strides = [1, 1]} : vector<8x326xbf16> to vector<8x288xbf16>
    %cst_29 = arith.constant dense<0.000000e+00> : vector<8x288xf32>
    %46 = tpu.matmul %44, %45, %cst_29 {dimension_numbers = #tpu.dot_dimension_numbers<[1], [0], [0], [1], [0, 0, 1, 1], [], []>} : vector<8x8xbf16>, vector<8x288xbf16>, vector<8x288xf32> -> vector<8x288xf32>
    %47 = arith.addf %42, %46 : vector<8x288xf32>
    %c0_30 = arith.constant 0 : index
    %c0_31 = arith.constant 0 : index
    %48 = vector.load %arg2[%c0_30, %c0_31] : memref<8x1xf32, #tpu.memory_space<vmem>>, vector<8x1xf32>
    %49 = vector.broadcast %48 : vector<8x1xf32> to vector<8x288xf32>
    %50 = arith.addf %47, %49 : vector<8x288xf32>
    %51 = vector.shape_cast %50 : vector<8x288xf32> to vector<2x4x288xf32>
    %cst_32 = arith.constant dense<0xFF800000> : vector<2x288xf32>
    %52 = vector.multi_reduction <maximumf>, %51, %cst_32 [1] : vector<2x4x288xf32> to vector<2x288xf32>
    %53 = vector.shape_cast %52 : vector<2x288xf32> to vector<2x1x288xf32>
    %54 = vector.broadcast %53 : vector<2x1x288xf32> to vector<2x4x288xf32>
    %55 = arith.subf %51, %54 : vector<2x4x288xf32>
    %56 = math.exp %55 : vector<2x4x288xf32>
    %cst_33 = arith.constant dense<0.000000e+00> : vector<2x288xf32>
    %57 = vector.multi_reduction <add>, %56, %cst_33 [1] : vector<2x4x288xf32> to vector<2x288xf32>
    %58 = vector.shape_cast %57 : vector<2x288xf32> to vector<2x1x288xf32>
    %59 = math.log %58 : vector<2x1x288xf32>
    %60 = arith.addf %53, %59 : vector<2x1x288xf32>
    %61 = vector.broadcast %60 : vector<2x1x288xf32> to vector<2x4x288xf32>
    %62 = arith.subf %51, %61 : vector<2x4x288xf32>
    %63 = vector.shape_cast %62 : vector<2x4x288xf32> to vector<8x288xf32>
    %c0_34 = arith.constant 0 : index
    %c0_35 = arith.constant 0 : index
    %c0_36 = arith.constant 0 : index
    %64 = vector.load %arg4[%c0_34, %c0_35, %c0_36] : memref<1x8x288xf32, #tpu.memory_space<vmem>>, vector<1x8x288xf32>
    %65 = vector.shape_cast %64 : vector<1x8x288xf32> to vector<8x288xf32>
    %66 = vector.shape_cast %63 : vector<8x288xf32> to vector<1x8x288xf32>
    tpu.vector_store %arg4[%c0_34, %c0_35, %c0_36], %66 {strides = array<i32>} : memref<1x8x288xf32, #tpu.memory_space<vmem>>, vector<1x8x288xf32>,
    return
  }
  func.func @transform_0(%arg0: i32) -> (i32, i32, i32) {
    %c0_i32 = arith.constant 0 : i32
    %c0_i32_0 = arith.constant 0 : i32
    %c0_i32_1 = arith.constant 0 : i32
    %c0_i32_2 = arith.constant 0 : i32
    return %c0_i32, %c0_i32_0, %c0_i32_1 : i32, i32, i32
  }
  func.func @transform_1(%arg0: i32) -> (i32, i32) {
    %c0_i32 = arith.constant 0 : i32
    %c0_i32_0 = arith.constant 0 : i32
    %c0_i32_1 = arith.constant 0 : i32
    return %c0_i32, %c0_i32_0 : i32, i32
  }
  func.func @transform_2(%arg0: i32) -> (i32, i32, i32) {
    %c0_i32 = arith.constant 0 : i32
    %c0_i32_0 = arith.constant 0 : i32
    %c0_i32_1 = arith.constant 0 : i32
    return %arg0, %c0_i32, %c0_i32_0 : i32, i32, i32
  }
  func.func @transform_3(%arg0: i32) -> (i32, i32, i32) {
    %c0_i32 = arith.constant 0 : i32
    %c0_i32_0 = arith.constant 0 : i32
    %c0_i32_1 = arith.constant 0 : i32
    return %arg0, %c0_i32, %c0_i32_0 : i32, i32, i32
  }
}

</mosaic_0001>

<bundles_post_ra>
// kernel: tpu_custom_call.1
= control target key start
LH: loop header
LB: loop body
LE: loop exit
PB: predicated region body
PF: predicated region fallthrough
CT: control target
= control target key end

     0   :  { %8 = vsyncpa [#allocation3], 0  ;;  %s1940_s0 = inlined_call_operand.vmem [shape: bf16[9,8,8], index: 0, kind: input, shape index: {}]   ;;  %s1941_s1 = inlined_call_operand.vmem [shape: f32[8,1], index: 1, kind: input, shape index: {}]   ;;  %s1942_s2 = inlined_call_operand.vmem [shape: bf16[2,8,326], index: 2, kind: input, shape index: {}]   ;;  %s1943_s3 = inlined_call_operand.hbm [shape: f32[2,8,288], index: 3, kind: output, shape index: {}]  }
   0x1   :  { %10 = vsyncpa [#allocation3 + $0x1], 0  ;;  %s1671_s12 = smov 0   ;;  %s1673_s13 = smov 0  }
   0x2   :  { %s1675_s14 = smov 0   ;;  %s1677_s15 = smov 0  }
   0x3 LB: > { %s1692_s16 = sadd.s32 4294967295, %s1637_s15   ;;  %s1380_s17 = sadd.s32 4294967294, %s1637_s15   ;;  %s1637_s15 = sphi %s1677_s15, %s1949_s15   ;;  %s1633_s14 = sphi %s1675_s14, %s1948_s14   ;;  %s1629_s13 = sphi %s1673_s13, %s1947_s13   ;;  %s1625_s12 = sphi %s1671_s12, %s1946_s12  }
   0x4   : > { %s1696_s18 = sadd.s32 1, %s1637_s15   ;;  %s91_s19 = sadd.s32 1, %s1633_s14 }
   0x5   : > { %s88_s20 = ssub.s32 %s1637_s15, %s1696_s18  ;;  %p101_p0 = scmp.ne.s32.totalorder %s1633_s14, %s1629_s13 }
   0x6   : > { %p89_p1 = scmp.eq.s32.totalorder %s88_s20, 0  ;;  %p102_p2 = scmp.eq.s32.totalorder %s1692_s16, 1 }
   0x7   : > { %p107_p3 = scmp.ne.s32.totalorder %s1629_s13, %s1625_s12  ;;  %p108_p4 = scmp.eq.s32.totalorder %s1380_s17, 1 }
   0x8   : > { %s1707_s21 = scalar_select %p89_p1, %s1633_s14, %s91_s19  }
   0x9   : > { %p1709_p5 = por %p102_p2, %p101_p0  ;;  %p1713_p6 = por %p108_p4, %p107_p3 }
   0xa   : > { %p1383_p7 = scmp.ge.s32.totalorder %s1637_s15, 1  ;;  %p140_p8 = scmp.lt.s32.totalorder %s1637_s15, 3 }
   0xc   : > { %p141_p9 = pnand %p1383_p7, %p140_p8 }
   0xd   : > { %p164_p10 = scmp.lt.s32.totalorder (!%p141_p9), %s1692_s16, 1  ;;  %s1642_s29 = smov (!%p141_p9), 127  }
   0xe   : > { %144 = sbr.rel (%p141_p9) target bundleno = 503 (0x1f7), region = 32  ;;  %s1643_s30 = smov (!%p141_p9), 126  }
   0xf   : > { %s1644_s4 = smov (!%p141_p9), 110   ;;  %s1645_s5 = smov (!%p141_p9), 109  }
  0x10   : > { %s1646_s6 = smov (!%p141_p9), 108   ;;  %s1647_s7 = smov (!%p141_p9), 92  }
  0x11   : > { %s1648_s8 = smov (!%p141_p9), 91   ;;  %s1649_s9 = smov (!%p141_p9), 90  }
  0x12   : > { %s161_s17 = sand.u32 (!%p141_p9), 1, %s1629_s13  }
  0x13   : > { %v1639_v0 = vmov 0.0   ;;  %vm1640_vm0 = vmmov 0   ;;  %s165_s24 = scalar_select %p164_p10, %s1692_s16, 1  ;;  %v1641_v1 = vmov 0   ;;  %v1129_v6 = vld [vmem:[%s1941_s1] sm:$0xff]  ;;  %vm196_vm1 = vcmask 1043456  }
  0x14   : > { %1446 = vmatprep.subr.bf16.mxu1 %v1639_v0  ;;  %1448 = vmatprep.mubr.msk.bf16.mxu1 %vm1640_vm0, %v1639_v0  ;;  %v1385_v10 = vld [vmem:[%s1940_s0 + $0x4] sm:$0xf]  ;;  %vm192_vm2 = vcmask 64512   ;;  %vm189_vm3 = vcmask 1039360   ;;  %vm388_vm4 = vcmask 1031168   ;;  %vm495_vm5 = vcmask 900096  }
  0x15   : > { %s1501_s25 = smul.u32 12, %s165_s24  ;;  %238 = vmatprep.mubr.bf16.mxu0 %v1641_v1  ;;  %1553 = vset.pattern.permute.xlu0 %v1641_v1  ;;  %v172_v20 = vld [vmem:[%s1940_s0] sm:$0xf]  ;;  %v1395_v29 = vld [vmem:[%s1940_s0 + $0x8] sm:$0xf]  ;;  %vm602_vm6 = vcmask 891904  }
  0x16   : > { %v1399_v37 = vld [vmem:[%s1940_s0 + $0xc] sm:$0xf]  ;;  %vm709_vm7 = vcmask 883712   ;;  %v1403_v45 = vld [vmem:[%s1940_s0 + $0x10] sm:$0xf]  ;;  %vm816_vm8 = vcmask 752640  }
  0x17   : > { %s168_s28 = scalar_lea.vmem %s1942_s2, %s1501_s25  ;;  %v1407_v53 = vld [vmem:[%s1940_s0 + $0x14] sm:$0xf]  ;;  %vm923_vm9 = vcmask 744448   ;;  %v1411_v61 = vld [vmem:[%s1940_s0 + $0x18] sm:$0xf]  ;;  %vm1030_vm10 = vcmask 736256  }
  0x18   : > { %v1554_v2 = vld [vmem:[%s168_s28 + $0x8] ss:$0 sps:$4 sm:$0xff]   ;;  %v170_v3 = vld [vmem:[%s168_s28] sm:$0xff]  ;;  %vm1165_vm11 = vcmask 257024   ;;  %s1500_s19 = smul.u32 24, %s161_s17  ;;  %vm1304_vm12 = vcmask 261120  }
  0x19   : > { %v1386_v4 = vcombine.low %v170_v3, %v170_v3  ;;  %187 = vrot.lane.b32.xlu1 %v1554_v2, %s1642_s29  ;;  %v1387_v5 = vcombine.high %v170_v3, %v170_v3  ;;  %v297_v11 = vsel %vm196_vm1, %v1554_v2, 0  ;;  %s1502_s24 = smul.u32 384, %s1692_s16  ;;  %s1650_s16 = smov [#allocation2]  }
  0x1a   : > { %s163_s20 = scalar_lea.vmem [#allocation2], %s1500_s19 }
  0x1b   : > { %183 = vrot.lane.b32.xlu0 %v1386_v4, %s1642_s29  ;;  %v291_v18 = vsel %vm196_vm1, %v1386_v4, 0  ;;  %s1321_s25 = sshll.u32 %s163_s20, 4  ;;  %s1903_s28 = scalar_lea.hbm %s1943_s3, %s1502_s24  ;;  %s1322_s25 = int_to_ptr.vmem [resolvable:$true] %s1321_s25 }
  0x1d   : > { %382 = vrot.lane.b32.xlu1 %v1386_v4, %s1643_s30 }
  0x1f   : > { %185 = vrot.lane.b32.xlu0 %v1387_v5, %s1642_s29  ;;  %s1307_s29 = scalar_lea.sflag [#allocation3], %s161_s17 }
  0x21   : > { %386 = vrot.lane.b32.xlu1 %v1554_v2, %s1643_s30 }
  0x23   : > { %384 = vrot.lane.b32.xlu0 %v1387_v5, %s1643_s30  ;;  %s1577_s30 = scalar_lea.vmem %s1322_s25, 384 }
  0x24   : > { %p1578_p11 = scmp.ne.s32.totalorder %s1322_s25, %s1577_s30 }
  0x25   : > { %491 = vrot.lane.b32.xlu1 %v1387_v5, %s1644_s4 }
  0x26   : > { %p1579_p12 = pnand %p1578_p11, %p1709_p5 }
  0x27   : > { %489 = vrot.lane.b32.xlu0 %v1386_v4, %s1644_s4 }
  0x28   : > { %p1580_p13 = pneg %p1579_p12 }
  0x29   : > { %596 = vrot.lane.b32.xlu1 %v1386_v4, %s1645_s5 }
  0x2b   : > { %493 = vrot.lane.b32.xlu0 %v1554_v2, %s1644_s4  ;;  %s1581_s4 = sshll.u32 %s1650_s16, 4  ;;  %s1582_s4 = int_to_ptr.vmem [resolvable:$false] %s1581_s4 }
  0x2c   : > { %p1584_p0 = scmp.lt.s32.totalorder %s1322_s25, %s1582_s4 }
  0x2d   : > { %600 = vrot.lane.b32.xlu1 %v1554_v2, %s1645_s5 }
  0x2f   : > { %598 = vrot.lane.b32.xlu0 %v1387_v5, %s1645_s5  ;;  %s1583_s5 = scalar_lea.vmem %s1582_s4, 768 }
  0x30   : > { %p1585_p1 = scmp.lt.s32.totalorder %s1583_s5, %s1577_s30 }
  0x31   : > { %705 = vrot.lane.b32.xlu1 %v1387_v5, %s1646_s6 }
  0x32   : > { %p1586_p2 = por %p1585_p1, %p1584_p0 }
  0x33   : > { %703 = vrot.lane.b32.xlu0 %v1386_v4, %s1646_s6 }
  0x34   : > { %p1587_p3 = pnand %p1586_p2, %p1580_p13 }
  0x35   : > { %810 = vrot.lane.b32.xlu1 %v1386_v4, %s1647_s7 }
  0x37   : > { %707 = vrot.lane.b32.xlu0 %v1554_v2, %s1646_s6 }
  0x39   : > { %814 = vrot.lane.b32.xlu1 %v1554_v2, %s1647_s7 }
  0x3b   : > { %812 = vrot.lane.b32.xlu0 %v1387_v5, %s1647_s7 }
  0x3d   : > { %919 = vrot.lane.b32.xlu1 %v1387_v5, %s1648_s8 }
  0x3f   : > { %917 = vrot.lane.b32.xlu0 %v1386_v4, %s1648_s8 }
  0x41   : > { %1024 = vrot.lane.b32.xlu1 %v1386_v4, %s1649_s9 }
  0x43   : > { %921 = vrot.lane.b32.xlu0 %v1554_v2, %s1648_s8 }
  0x45   : > { %1028 = vrot.lane.b32.xlu1 %v1554_v2, %s1649_s9 }
  0x47   : > { %1026 = vrot.lane.b32.xlu0 %v1387_v5, %s1649_s9 }
  0x4b   : > { %1132 = vperm.xlu0 %1553, %v1129_v6   ;;  %v1415_v6 = vld [vmem:[%s1940_s0 + $0x1c] sm:$0xf] }
  0x8b   : > { %v188_v7 = vpop.permute.xlu1 %187 }
  0x8c   : > { %v204_v9 = vsel %vm196_vm1, %v188_v7, 0 }
  0x8d   : > { %v184_v8 = vpop.permute.xlu0 %183  ;;  %1447 = vmatpush3.bf16.msra.mxu1 %v204_v9 }
  0x8e   : > { %1452 = vmatprep.subr.bf16.mxu1 %v1639_v0 }
  0x8f   : > { %v383_v12 = vpop.permute.xlu1 %382 }
  0x90   : > { %1449 = vmatmul.mubr.msk.bf16.vlgmr.msra.gmra.mxu1 %vm192_vm2, %v1385_v10 }
  0x91   : > { %v186_v13 = vpop.permute.xlu0 %185  ;;  %1453 = vmatpush3.bf16.msra.mxu1 %v297_v11  ;;  %1454 = vmatprep.mubr.msk.bf16.mxu1 %vm1640_vm0, %v1639_v0  ;;  %v1419_v11 = vld [vmem:[%s1940_s0 + $0x20] sm:$0xf] }
  0x92   : > { %v191_v14 = vsel %vm189_vm3, %v186_v13, %v188_v7  ;;  %v190_v15 = vsel %vm189_vm3, %v184_v8, %v186_v13  ;;  %1458 = vmatprep.subr.bf16.mxu1 %v1639_v0 }
  0x93   : > { %1389 = vmatprep.subr.msk.bf16.mxu0 %vm196_vm1, %v191_v14  ;;  %v198_v16 = vsel %vm196_vm1, %v190_v15, 0  ;;  %v387_v17 = vpop.permute.xlu1 %386 }
  0x94   : > { %221 = vmatpush1.bf16.msra.mxu0 %v198_v16  ;;  %v401_v22 = vsel %vm196_vm1, %v387_v17, 0 }
  0x95   : > { %1392 = vmatprep.subr.msk.bf16.mxu0 %vm196_vm1, %v1387_v5  ;;  %v385_v19 = vpop.permute.xlu0 %384 }
  0x96   : > { %v390_v21 = vsel %vm388_vm4, %v385_v19, %v387_v17  ;;  %v389_v25 = vsel %vm388_vm4, %v383_v12, %v385_v19 }
  0x97   : > { %1390 = vmatmul.mubr.msk.bf16.vlgmr.msra.gmra.mxu0 %vm192_vm2, %v1385_v10  ;;  %v492_v23 = vpop.permute.xlu1 %491  ;;  %v395_v26 = vsel %vm196_vm1, %v389_v25, 0 }
  0x98   : > { %314 = vmatpush1.bf16.msra.mxu0 %v291_v18  ;;  %331 = vmatprep.mubr.bf16.mxu0 %v1641_v1 }
  0x99   : > { %1455 = vmatmul.mubr.msk.bf16.vlgmr.msra.gmra.mxu1 %vm192_vm2, %v172_v20  ;;  %1396 = vmatprep.subr.msk.bf16.mxu0 %vm196_vm1, %v390_v21  ;;  %v490_v24 = vpop.permute.xlu0 %489 }
  0x9a   : > { %1459 = vmatpush3.bf16.msra.mxu1 %v401_v22  ;;  %1460 = vmatprep.mubr.msk.bf16.mxu1 %vm1640_vm0, %v1639_v0  ;;  %v496_v33 = vsel %vm495_vm5, %v490_v24, %v492_v23 }
  0x9b   : > { %1464 = vmatprep.subr.bf16.mxu1 %v1639_v0  ;;  %v597_v28 = vpop.permute.xlu1 %596  ;;  %v502_v35 = vsel %vm196_vm1, %v496_v33, 0 }
  0x9d   : > { %v494_v27 = vpop.permute.xlu0 %493 }
  0x9e   : > { %v497_v30 = vsel %vm495_vm5, %v492_v23, %v494_v27  ;;  %v508_v31 = vsel %vm196_vm1, %v494_v27, 0 }
  0x9f   : > { %1393 = vmatmul.mubr.msk.bf16.vlgmr.msra.gmra.mxu0 %vm192_vm2, %v172_v20  ;;  %v601_v34 = vpop.permute.xlu1 %600 }
  0xa0   : > { %418 = vmatpush1.bf16.msra.mxu0 %v395_v26  ;;  %435 = vmatprep.mubr.bf16.mxu0 %v1641_v1  ;;  %v615_v39 = vsel %vm196_vm1, %v601_v34, 0 }
  0xa1   : > { %1461 = vmatmul.mubr.msk.bf16.vlgmr.msra.gmra.mxu1 %vm192_vm2, %v1395_v29  ;;  %1400 = vmatprep.subr.msk.bf16.mxu0 %vm196_vm1, %v497_v30  ;;  %v599_v32 = vpop.permute.xlu0 %598 }
  0xa2   : > { %1465 = vmatpush3.bf16.msra.mxu1 %v508_v31  ;;  %1466 = vmatprep.mubr.msk.bf16.mxu1 %vm1640_vm0, %v1639_v0  ;;  %v604_v38 = vsel %vm602_vm6, %v599_v32, %v601_v34  ;;  %v603_v41 = vsel %vm602_vm6, %v597_v28, %v599_v32 }
  0xa3   : > { %1470 = vmatprep.subr.bf16.mxu1 %v1639_v0  ;;  %v706_v40 = vpop.permute.xlu1 %705  ;;  %v609_v43 = vsel %vm196_vm1, %v603_v41, 0 }
  0xa5   : > { %v704_v36 = vpop.permute.xlu0 %703 }
  0xa6   : > { %v710_v49 = vsel %vm709_vm7, %v704_v36, %v706_v40 }
  0xa7   : > { %1397 = vmatmul.mubr.msk.bf16.vlgmr.msra.gmra.mxu0 %vm192_vm2, %v1395_v29  ;;  %v811_v44 = vpop.permute.xlu1 %810  ;;  %v716_v51 = vsel %vm196_vm1, %v710_v49, 0 }
  0xa8   : > { %525 = vmatpush1.bf16.msra.mxu0 %v502_v35  ;;  %542 = vmatprep.mubr.bf16.mxu0 %v1641_v1 }
  0xa9   : > { %1467 = vmatmul.mubr.msk.bf16.vlgmr.msra.gmra.mxu1 %vm192_vm2, %v1399_v37  ;;  %1404 = vmatprep.subr.msk.bf16.mxu0 %vm196_vm1, %v604_v38  ;;  %v708_v42 = vpop.permute.xlu0 %707 }
  0xaa   : > { %1471 = vmatpush3.bf16.msra.mxu1 %v615_v39  ;;  %1472 = vmatprep.mubr.msk.bf16.mxu1 %vm1640_vm0, %v1639_v0  ;;  %v711_v46 = vsel %vm709_vm7, %v706_v40, %v708_v42  ;;  %v722_v47 = vsel %vm196_vm1, %v708_v42, 0 }
  0xab   : > { %1476 = vmatprep.subr.bf16.mxu1 %v1639_v0  ;;  %v815_v50 = vpop.permute.xlu1 %814 }
  0xac   : > { %v829_v55 = vsel %vm196_vm1, %v815_v50, 0 }
  0xad   : > { %v813_v48 = vpop.permute.xlu0 %812 }
  0xae   : > { %v818_v54 = vsel %vm816_vm8, %v813_v48, %v815_v50  ;;  %v817_v57 = vsel %vm816_vm8, %v811_v44, %v813_v48 }
  0xaf   : > { %1401 = vmatmul.mubr.msk.bf16.vlgmr.msra.gmra.mxu0 %vm192_vm2, %v1399_v37  ;;  %v920_v56 = vpop.permute.xlu1 %919  ;;  %v823_v59 = vsel %vm196_vm1, %v817_v57, 0 }
  0xb0   : > { %632 = vmatpush1.bf16.msra.mxu0 %v609_v43  ;;  %649 = vmatprep.mubr.bf16.mxu0 %v1641_v1 }
  0xb1   : > { %1473 = vmatmul.mubr.msk.bf16.vlgmr.msra.gmra.mxu1 %vm192_vm2, %v1403_v45  ;;  %1408 = vmatprep.subr.msk.bf16.mxu0 %vm196_vm1, %v711_v46  ;;  %v918_v52 = vpop.permute.xlu0 %917 }
  0xb2   : > { %1477 = vmatpush3.bf16.msra.mxu1 %v722_v47  ;;  %1478 = vmatprep.mubr.msk.bf16.mxu1 %vm1640_vm0, %v1639_v0  ;;  %v924_v2 = vsel %vm923_vm9, %v918_v52, %v920_v56 }
  0xb3   : > { %1482 = vmatprep.subr.bf16.mxu1 %v1639_v0  ;;  %v1025_v60 = vpop.permute.xlu1 %1024  ;;  %v930_v5 = vsel %vm196_vm1, %v924_v2, 0 }
  0xb5   : > { %v922_v58 = vpop.permute.xlu0 %921 }
  0xb6   : > { %v925_v62 = vsel %vm923_vm9, %v920_v56, %v922_v58  ;;  %v936_v63 = vsel %vm196_vm1, %v922_v58, 0 }
  0xb7   : > { %1405 = vmatmul.mubr.msk.bf16.vlgmr.msra.gmra.mxu0 %vm192_vm2, %v1403_v45  ;;  %v1029_v4 = vpop.permute.xlu1 %1028 }
  0xb8   : > { %739 = vmatpush1.bf16.msra.mxu0 %v716_v51  ;;  %756 = vmatprep.mubr.bf16.mxu0 %v1641_v1  ;;  %v1043_v8 = vsel %vm196_vm1, %v1029_v4, 0 }
  0xb9   : > { %1479 = vmatmul.mubr.msk.bf16.vlgmr.msra.gmra.mxu1 %vm192_vm2, %v1407_v53  ;;  %1412 = vmatprep.subr.msk.bf16.mxu0 %vm196_vm1, %v818_v54  ;;  %v1027_v3 = vpop.permute.xlu0 %1026 }
  0xba   : > { %1483 = vmatpush3.bf16.msra.mxu1 %v829_v55  ;;  %1484 = vmatprep.mubr.msk.bf16.mxu1 %vm1640_vm0, %v1639_v0  ;;  %v1032_v7 = vsel %vm1030_vm10, %v1027_v3, %v1029_v4  ;;  %v1031_v9 = vsel %vm1030_vm10, %v1025_v60, %v1027_v3 }
  0xbb   : > { %1488 = vmatprep.subr.bf16.mxu1 %v1639_v0  ;;  %v1037_v10 = vsel %vm196_vm1, %v1031_v9, 0 }
  0xbf   : > { %1409 = vmatmul.mubr.msk.bf16.vlgmr.msra.gmra.mxu0 %vm192_vm2, %v1407_v53 }
  0xc0   : > { %846 = vmatpush1.bf16.msra.mxu0 %v823_v59  ;;  %863 = vmatprep.mubr.bf16.mxu0 %v1641_v1 }
  0xc1   : > { %1485 = vmatmul.mubr.msk.bf16.vlgmr.msra.gmra.mxu1 %vm192_vm2, %v1411_v61  ;;  %1416 = vmatprep.subr.msk.bf16.mxu0 %vm196_vm1, %v925_v62 }
  0xc2   : > { %1489 = vmatpush3.bf16.msra.mxu1 %v936_v63  ;;  %1490 = vmatprep.mubr.msk.bf16.mxu1 %vm1640_vm0, %v1639_v0 }
  0xc3   : > { %1494 = vmatprep.subr.bf16.mxu1 %v1639_v0 }
  0xc7   : > { %1413 = vmatmul.mubr.msk.bf16.vlgmr.msra.gmra.mxu0 %vm192_vm2, %v1411_v61 }
  0xc8   : > { %953 = vmatpush1.bf16.msra.mxu0 %v930_v5  ;;  %970 = vmatprep.mubr.bf16.mxu0 %v1641_v1 }
  0xc9   : > { %1491 = vmatmul.mubr.msk.bf16.vlgmr.msra.gmra.mxu1 %vm192_vm2, %v1415_v6  ;;  %1420 = vmatprep.subr.msk.bf16.mxu0 %vm196_vm1, %v1032_v7 }
  0xca   : > { %1495 = vmatpush3.bf16.msra.mxu1 %v1043_v8  ;;  %1496 = vmatprep.mubr.msk.bf16.mxu1 %vm1640_vm0, %v1639_v0 }
  0xcf   : > { %1417 = vmatmul.mubr.msk.bf16.vlgmr.msra.gmra.mxu0 %vm192_vm2, %v1415_v6 }
  0xd0   : > { %1060 = vmatpush1.bf16.msra.mxu0 %v1037_v10  ;;  %1077 = vmatprep.mubr.bf16.mxu0 %v1641_v1 }
  0xd1   : > { %1497 = vmatmul.mubr.msk.bf16.vlgmr.msra.gmra.mxu1 %vm192_vm2, %v1419_v11 }
  0xd7   : > { %1421 = vmatmul.mubr.msk.bf16.vlgmr.msra.gmra.mxu0 %vm192_vm2, %v1419_v11 }
 0x150   : > { %v281_v12 = vpop.f32.mrf.mxu1 }
 0x152   : > { %v1450_v13 = vpop.f32.mrf.mxu1 }
 0x154   : > { %v284_v14 = vpop.f32.mrf.mxu1 }
 0x156   : > { %v1451_v0 = vpop.f32.mrf.mxu1 }
 0x157   : > { %v240_v15 = vpop.f32.mrf.mxu0 }
 0x159   : > { %v242_v16 = vpop.f32.mrf.mxu0  ;;  %v374_v17 = vpop.f32.mrf.mxu1 }
 0x15a   : > { %v375_v57 = vadd.f32 %v374_v17, %v281_v12 }
 0x15b   : > { %v244_v18 = vpop.f32.mrf.mxu0  ;;  %v1456_v19 = vpop.f32.mrf.mxu1 }
 0x15d   : > { %v245_v20 = vpop.f32.mrf.mxu0  ;;  %v377_v21 = vpop.f32.mrf.mxu1 }
 0x15f   : > { %v333_v22 = vpop.f32.mrf.mxu0  ;;  %v1457_v23 = vpop.f32.mrf.mxu1 }
 0x160   : > { %v334_v6 = vadd.f32 %v333_v22, %v240_v15 }
 0x161   : > { %v335_v24 = vpop.f32.mrf.mxu0  ;;  %v478_v25 = vpop.f32.mrf.mxu1 }
 0x162   : > { %v486_v62 = vadd.f32 %v478_v25, %v375_v57  ;;  %v336_v10 = vadd.f32 %v335_v24, %v242_v16 }
 0x163   : > { %v337_v1 = vpop.f32.mrf.mxu0  ;;  %v1462_v26 = vpop.f32.mrf.mxu1 }
 0x164   : > { %v1133_v1 = vpop.permute.xlu0 %1132 }
 0x165   : > { %v338_v27 = vpop.f32.mrf.mxu0  ;;  %v481_v28 = vpop.f32.mrf.mxu1 }
 0x167   : > { %v437_v29 = vpop.f32.mrf.mxu0  ;;  %v1463_v30 = vpop.f32.mrf.mxu1 }
 0x168   : > { %v484_v11 = vadd.f32 %v437_v29, %v334_v6 }
 0x169   : > { %v439_v31 = vpop.f32.mrf.mxu0  ;;  %v585_v32 = vpop.f32.mrf.mxu1 }
 0x16a   : > { %v593_v3 = vadd.f32 %v585_v32, %v486_v62  ;;  %v485_v12 = vadd.f32 %v439_v31, %v336_v10 }
 0x16b   : > { %v441_v33 = vpop.f32.mrf.mxu0  ;;  %v1468_v34 = vpop.f32.mrf.mxu1 }
 0x16d   : > { %v442_v35 = vpop.f32.mrf.mxu0  ;;  %v588_v36 = vpop.f32.mrf.mxu1 }
 0x16f   : > { %v544_v37 = vpop.f32.mrf.mxu0  ;;  %v1469_v38 = vpop.f32.mrf.mxu1 }
 0x170   : > { %v591_v17 = vadd.f32 %v544_v37, %v484_v11 }
 0x171   : > { %v546_v39 = vpop.f32.mrf.mxu0  ;;  %v692_v40 = vpop.f32.mrf.mxu1 }
 0x172   : > { %v700_v7 = vadd.f32 %v692_v40, %v593_v3  ;;  %v592_v21 = vadd.f32 %v546_v39, %v485_v12 }
 0x173   : > { %v548_v41 = vpop.f32.mrf.mxu0  ;;  %v1474_v42 = vpop.f32.mrf.mxu1 }
 0x175   : > { %v549_v43 = vpop.f32.mrf.mxu0  ;;  %v695_v44 = vpop.f32.mrf.mxu1 }
 0x177   : > { %v651_v45 = vpop.f32.mrf.mxu0  ;;  %v1475_v46 = vpop.f32.mrf.mxu1 }
 0x178   : > { %v698_v23 = vadd.f32 %v651_v45, %v591_v17 }
 0x179   : > { %v653_v47 = vpop.f32.mrf.mxu0  ;;  %v799_v48 = vpop.f32.mrf.mxu1 }
 0x17a   : > { %v807_v13 = vadd.f32 %v799_v48, %v700_v7  ;;  %v699_v15 = vadd.f32 %v653_v47, %v592_v21 }
 0x17b   : > { %v655_v49 = vpop.f32.mrf.mxu0  ;;  %v1480_v50 = vpop.f32.mrf.mxu1 }
 0x17d   : > { %v656_v51 = vpop.f32.mrf.mxu0  ;;  %v802_v52 = vpop.f32.mrf.mxu1 }
 0x17f   : > { %v758_v53 = vpop.f32.mrf.mxu0  ;;  %v1481_v54 = vpop.f32.mrf.mxu1 }
 0x180   : > { %v805_v22 = vadd.f32 %v758_v53, %v698_v23 }
 0x181   : > { %v760_v55 = vpop.f32.mrf.mxu0  ;;  %v906_v56 = vpop.f32.mrf.mxu1 }
 0x182   : > { %v914_v18 = vadd.f32 %v906_v56, %v807_v13  ;;  %v806_v24 = vadd.f32 %v760_v55, %v699_v15 }
 0x183   : > { %v762_v58 = vpop.f32.mrf.mxu0  ;;  %v1486_v59 = vpop.f32.mrf.mxu1 }
 0x185   : > { %v763_v60 = vpop.f32.mrf.mxu0  ;;  %v909_v61 = vpop.f32.mrf.mxu1 }
 0x187   : > { %v865_v63 = vpop.f32.mrf.mxu0  ;;  %v1487_v2 = vpop.f32.mrf.mxu1 }
 0x188   : > { %v912_v29 = vadd.f32 %v865_v63, %v805_v22 }
 0x189   : > { %v867_v4 = vpop.f32.mrf.mxu0  ;;  %v1013_v5 = vpop.f32.mrf.mxu1 }
 0x18a   : > { %v1021_v25 = vadd.f32 %v1013_v5, %v914_v18  ;;  %v913_v34 = vadd.f32 %v867_v4, %v806_v24 }
 0x18b   : > { %v869_v8 = vpop.f32.mrf.mxu0  ;;  %v1492_v9 = vpop.f32.mrf.mxu1 }
 0x18d   : > { %v870_v14 = vpop.f32.mrf.mxu0  ;;  %v1016_v0 = vpop.f32.mrf.mxu1 }
 0x18f   : > { %v972_v19 = vpop.f32.mrf.mxu0  ;;  %v1493_v20 = vpop.f32.mrf.mxu1 }
 0x190   : > { %v1019_v35 = vadd.f32 %v972_v19, %v912_v29 }
 0x191   : > { %v974_v26 = vpop.f32.mrf.mxu0  ;;  %v1120_v27 = vpop.f32.mrf.mxu1 }
 0x192   : > { %v1128_v28 = vadd.f32 %v1120_v27, %v1021_v25  ;;  %v1020_v41 = vadd.f32 %v974_v26, %v913_v34 }
 0x193   : > { %v976_v30 = vpop.f32.mrf.mxu0  ;;  %v1498_v16 = vpop.f32.mrf.mxu1 }
 0x194   : > { %v1838_v32 = vadd.f32 %v1133_v1, %v1128_v28 }
 0x195   : > { %v977_v31 = vpop.f32.mrf.mxu0  ;;  %v1123_v33 = vpop.f32.mrf.mxu1 }
 0x196   : > { %v1842_v36 = vcombine.high %v1838_v32, %v1838_v32  ;;  %v1166_v37 = vsel %vm1165_vm11, %v1838_v32, -inf }
 0x197   : > { %v1167_v38 = vrot.slane %v1166_v37, 4  ;;  %v1079_v39 = vpop.f32.mrf.mxu0  ;;  %v1499_v40 = vpop.f32.mrf.mxu1 }
 0x198   : > { %v1187_v42 = vsel %vm1165_vm11, %v1842_v36, -inf  ;;  %v1126_v43 = vadd.f32 %v1079_v39, %v1019_v35 }
 0x199   : > { %v1168_v44 = vmax.f32 %v1166_v37, %v1167_v38  ;;  %v1188_v45 = vrot.slane %v1187_v42, 4  ;;  %v1081_v46 = vpop.f32.mrf.mxu0 }
 0x19a   : > { %v1127_v47 = vadd.f32 %v1081_v46, %v1020_v41  ;;  %v1135_v51 = vadd.f32 %v1133_v1, %v1126_v43 }
 0x19b   : > { %v1169_v48 = vrot.slane %v1168_v44, 2  ;;  %v1189_v49 = vmax.f32 %v1187_v42, %v1188_v45  ;;  %v1083_v50 = vpop.f32.mrf.mxu0 }
 0x19c   : > { %v1136_v52 = vadd.f32 %v1133_v1, %v1127_v47 }
 0x19d   : > { %v1170_v53 = vmax.f32 %v1168_v44, %v1169_v48  ;;  %v1190_v54 = vrot.slane %v1189_v49, 2  ;;  %v1084_v55 = vpop.f32.mrf.mxu0 }
 0x19e   : > { %v1848_v56 = vcombine.low %v1135_v51, %v1136_v52  ;;  %v1850_v57 = vcombine.high %v1135_v51, %v1136_v52  ;;  %v1423_v58 = vcombine.low %v1136_v52, %v1136_v52  ;;  %v1424_v59 = vcombine.high %v1136_v52, %v1136_v52 }
 0x19f   : > { %v1171_v60 = vrot.slane %v1170_v53, 1  ;;  %v1191_v61 = vmax.f32 %v1189_v49, %v1190_v54 }
 0x1a0   : > { %v1151_v62 = vsel %vm196_vm1, %v1848_v56, -inf  ;;  %v1158_v63 = vsel %vm196_vm1, %v1423_v58, -inf  ;;  %v1173_v2 = vsel %vm196_vm1, %v1850_v57, -inf  ;;  %v1180_v3 = vsel %vm196_vm1, %v1424_v59, -inf }
 0x1a1   : > { %v1858_v4 = vmax.f32 %v1170_v53, %v1171_v60  ;;  %v1192_v5 = vrot.slane %v1191_v61, 1  ;;  %v1152_v6 = vrot.slane %v1151_v62, 4  ;;  %v1159_v7 = vrot.slane %v1158_v63, 4 }
 0x1a2   : > { %v1174_v8 = vrot.slane %v1173_v2, 4  ;;  %v1181_v9 = vrot.slane %v1180_v3, 4 }
 0x1a3   : > { %v1860_v10 = vmax.f32 %v1191_v61, %v1192_v5  ;;  %v1203_v11 = vsub.f32 %v1838_v32, %v1858_v4  ;;  %v1153_v13 = vmax.f32 %v1151_v62, %v1152_v6  ;;  %v1160_v14 = vmax.f32 %v1158_v63, %v1159_v7 }
 0x1a4   : > { %v1175_v0 = vmax.f32 %v1173_v2, %v1174_v8  ;;  %v1182_v12 = vmax.f32 %v1180_v3, %v1181_v9 }
 0x1a5   : > { %v1205_v17 = vsub.f32 %v1842_v36, %v1860_v10  ;;  %v1208_v18 = vmul.f32 1.442695, %v1203_v11  ;;  %v1154_v19 = vrot.slane %v1153_v13, 2  ;;  %v1161_v20 = vrot.slane %v1160_v14, 2 }
 0x1a6   : > { %v1176_v21 = vrot.slane %v1175_v0, 2  ;;  %v1183_v23 = vrot.slane %v1182_v12, 2 }
 0x1a7   : > { %1557 = vpow2.f32 %v1208_v18  ;;  %v1212_v25 = vmul.f32 1.442695, %v1205_v17  ;;  %v1155_v1 = vmax.f32 %v1153_v13, %v1154_v19  ;;  %v1162_v26 = vmax.f32 %v1160_v14, %v1161_v20 }
 0x1a8   : > { %v1177_v27 = vmax.f32 %v1175_v0, %v1176_v21  ;;  %v1184_v15 = vmax.f32 %v1182_v12, %v1183_v23 }
 0x1a9   : > { %1559 = vpow2.f32 %v1212_v25  ;;  %v1156_v22 = vrot.slane %v1155_v1, 1  ;;  %v1163_v28 = vrot.slane %v1162_v26, 1 }
 0x1aa   : > { %v1178_v30 = vrot.slane %v1177_v27, 1  ;;  %v1185_v16 = vrot.slane %v1184_v15, 1 }
 0x1ab   : > { %v1866_v24 = vmax.f32 %v1155_v1, %v1156_v22  ;;  %v1868_v29 = vmax.f32 %v1162_v26, %v1163_v28 }
 0x1ac   : > { %v1870_v31 = vmax.f32 %v1177_v27, %v1178_v30  ;;  %v1872_v33 = vmax.f32 %v1184_v15, %v1185_v16 }
 0x1ad   : > { %v1198_v34 = vcombine.low %v1866_v24, %v1868_v29 }
 0x1ae   : > { %v1199_v35 = vcombine.low %v1870_v31, %v1872_v33 }
 0x1af   : > { %v1202_v37 = vsub.f32 %v1848_v56, %v1198_v34 }
 0x1b0   : > { %v1204_v38 = vsub.f32 %v1850_v57, %v1199_v35 }
 0x1b1   : > { %v1206_v39 = vmul.f32 1.442695, %v1202_v37 }
 0x1b2   : > { %v1210_v40 = vmul.f32 1.442695, %v1204_v38 }
 0x1b3   : > { %1561 = vpow2.f32 %v1206_v39 }
 0x1b4   : > { %v1558_v41 = vpop.eup %1557  ;;  %1563 = vpow2.f32 %v1210_v40 }
 0x1b5   : > { %v1234_v42 = vsel %vm1165_vm11, %v1558_v41, 0.0 }
 0x1b6   : > { %v1560_v43 = vpop.eup %1559  ;;  %v1235_v44 = vrot.slane %v1234_v42, 4 }
 0x1b7   : > { %v1255_v45 = vsel %vm1165_vm11, %v1560_v43, 0.0 }
 0x1b8   : > { %v1236_v46 = vadd.f32 %v1235_v44, %v1234_v42  ;;  %v1256_v47 = vrot.slane %v1255_v45, 4 }
 0x1ba   : > { %v1237_v48 = vrot.slane %v1236_v46, 2  ;;  %v1257_v49 = vadd.f32 %v1256_v47, %v1255_v45 }
 0x1bc   : > { %v1238_v50 = vadd.f32 %v1237_v48, %v1236_v46  ;;  %v1258_v51 = vrot.slane %v1257_v49, 2 }
 0x1be   : > { %v1239_v52 = vrot.slane %v1238_v50, 1  ;;  %v1259_v53 = vadd.f32 %v1258_v51, %v1257_v49 }
 0x1c0   : > { %v1562_v54 = vpop.eup %1561  ;;  %v1240_v55 = vadd.f32 %v1239_v52, %v1238_v50  ;;  %v1260_v58 = vrot.slane %v1259_v53, 1 }
 0x1c1   : > { %v1564_v59 = vpop.eup %1563  ;;  %v1216_v60 = vcombine.high %v1562_v54, %v1562_v54  ;;  %v1220_v61 = vsel %vm196_vm1, %v1562_v54, 0.0 }
 0x1c2   : > { %v1261_v62 = vadd.f32 %v1260_v58, %v1259_v53  ;;  %1565 = vlog2.f32 %v1240_v55  ;;  %v1217_v63 = vcombine.high %v1564_v59, %v1564_v59  ;;  %v1221_v2 = vrot.slane %v1220_v61, 4 }
 0x1c3   : > { %v1227_v3 = vsel %vm196_vm1, %v1216_v60, 0.0  ;;  %v1241_v5 = vsel %vm196_vm1, %v1564_v59, 0.0 }
 0x1c4   : > { %1567 = vlog2.f32 %v1261_v62  ;;  %v1222_v6 = vadd.f32 %v1221_v2, %v1220_v61  ;;  %v1228_v7 = vrot.slane %v1227_v3, 4  ;;  %v1242_v8 = vrot.slane %v1241_v5, 4 }
 0x1c5   : > { %v1248_v9 = vsel %vm196_vm1, %v1217_v63, 0.0 }
 0x1c6   : > { %v1223_v11 = vrot.slane %v1222_v6, 2  ;;  %v1229_v13 = vadd.f32 %v1228_v7, %v1227_v3  ;;  %v1243_v14 = vadd.f32 %v1242_v8, %v1241_v5  ;;  %v1249_v0 = vrot.slane %v1248_v9, 4 }
 0x1c8   : > { %v1224_v12 = vadd.f32 %v1223_v11, %v1222_v6  ;;  %v1230_v17 = vrot.slane %v1229_v13, 2  ;;  %v1244_v18 = vrot.slane %v1243_v14, 2  ;;  %v1250_v19 = vadd.f32 %v1249_v0, %v1248_v9 }
 0x1ca   : > { %v1225_v20 = vrot.slane %v1224_v12, 1  ;;  %v1231_v21 = vadd.f32 %v1230_v17, %v1229_v13  ;;  %v1245_v23 = vadd.f32 %v1244_v18, %v1243_v14  ;;  %v1251_v25 = vrot.slane %v1250_v19, 2 }
 0x1cc   : > { %v1226_v1 = vadd.f32 %v1225_v20, %v1224_v12  ;;  %v1232_v26 = vrot.slane %v1231_v21, 1  ;;  %v1246_v27 = vrot.slane %v1245_v23, 1  ;;  %v1252_v15 = vadd.f32 %v1251_v25, %v1250_v19 }
 0x1ce   : > { %v1233_v22 = vadd.f32 %v1232_v26, %v1231_v21  ;;  %v1247_v28 = vadd.f32 %v1246_v27, %v1245_v23  ;;  %v1253_v30 = vrot.slane %v1252_v15, 1  ;;  %1569 = vlog2.f32 %v1226_v1 }
 0x1cf   : > { %v1566_v16 = vpop.eup %1565 }
 0x1d0   : > { %v1267_v34 = vmul.f32 0.6931472, %v1566_v16  ;;  %v1254_v35 = vadd.f32 %v1253_v30, %v1252_v15  ;;  %1571 = vlog2.f32 %v1233_v22 }
 0x1d1   : > { %v1568_v37 = vpop.eup %1567  ;;  %1573 = vlog2.f32 %v1247_v28 }
 0x1d2   : > { %v1273_v38 = vmul.f32 0.6931472, %v1568_v37  ;;  %v1276_v39 = vadd.f32 %v1267_v34, %v1858_v4  ;;  %1575 = vlog2.f32 %v1254_v35 }
 0x1d4   : > { %v1279_v40 = vadd.f32 %v1273_v38, %v1860_v10  ;;  %v1289_v41 = vsub.f32 %v1838_v32, %v1276_v39 }
 0x1d6   : > { %v1291_v42 = vsub.f32 %v1842_v36, %v1279_v40 }
 0x1d8   : > { %v1298_v43 = vcombine.low %v1289_v41, %v1291_v42 }
 0x1da   : > { %1305 = vst.msk [vmem:[%s163_s20 + $0x10] sm:$0xff] %vm1304_vm12, %v1298_v43 }
 0x1db   : > { %v1570_v44 = vpop.eup %1569 }
 0x1dc   : > { %v1263_v45 = vmul.f32 0.6931472, %v1570_v44 }
 0x1dd   : > { %v1572_v46 = vpop.eup %1571 }
 0x1de   : > { %v1574_v47 = vpop.eup %1573  ;;  %v1265_v48 = vmul.f32 0.6931472, %v1572_v46  ;;  %v1274_v51 = vadd.f32 %v1263_v45, %v1866_v24 }
 0x1df   : > { %v1576_v4 = vpop.eup %1575  ;;  %v1269_v49 = vmul.f32 0.6931472, %v1574_v47 }
 0x1e0   : > { %v1271_v50 = vmul.f32 0.6931472, %v1576_v4  ;;  %v1275_v32 = vadd.f32 %v1265_v48, %v1868_v29 }
 0x1e1   : > { %v1277_v36 = vadd.f32 %v1269_v49, %v1870_v31 }
 0x1e2   : > { %v1278_v10 = vadd.f32 %v1271_v50, %v1872_v33  ;;  %v1284_v52 = vcombine.low %v1274_v51, %v1275_v32 }
 0x1e4   : > { %v1285_v53 = vcombine.low %v1277_v36, %v1278_v10  ;;  %v1288_v54 = vsub.f32 %v1848_v56, %v1284_v52 }
 0x1e6   : > { %v1290_v55 = vsub.f32 %v1850_v57, %v1285_v53 }
 0x1e8   : > { %v1296_v58 = vcombine.low %v1288_v54, %v1290_v55  ;;  %v1297_v59 = vcombine.high %v1288_v54, %v1290_v55 }
 0x1ea   : > { %1302 = vst [vmem:[%s163_s20] sm:$0xff] %v1296_v58  ;;  %1303 = vst [vmem:[%s163_s20 + $0x8] sm:$0xff] %v1297_v59 }
 0x1eb   : > { %1590 = shalt.err (!%p1587_p3)
}
 0x1ec   : > { %s1591_s6 = scalar_lea.hbm %s1903_s28, 384  ;;  %s1595_s9 = scalar_lea.hbm %s1943_s3, 768 }
 0x1ed   : > { %p1592_p4 = scmp.ne.s32.totalorder %s1903_s28, %s1591_s6  ;;  %p1596_p9 = scmp.lt.s32.totalorder %s1903_s28, %s1943_s3 }
 0x1ee   : > { %p1597_p10 = scmp.lt.s32.totalorder %s1595_s9, %s1591_s6 }
 0x1ef   : > { %p1593_p7 = pnand %p1592_p4, %p1709_p5 }
 0x1f0   : > { %p1598_p11 = por %p1597_p10, %p1596_p9 }
 0x1f1   : > { %p1594_p8 = pneg %p1593_p7 }
 0x1f3   : > { %p1599_p12 = pnand %p1598_p11, %p1594_p8 }
 0x1f5   : > { %1602 = shalt.err (!%p1599_p12)
}
 0x1f6   : > { %1503 = dma.vmem_to_hbm [thread:$0]  (%p1709_p5), %s1322_s25, 384, %s1903_s28, %s1307_s29  }
 0x1f7 PF: > { %p1509_p13 = scmp.ge.s32.totalorder %s1637_s15, 2  ;;  %s1333_s17 = sand.u32 1, %s1625_s12  }
 0x1f8   : > { %s1334_s19 = scalar_lea.sflag [#allocation3], %s1333_s17 }
 0x1f9   : > { %p1506_p0 = pnand %p1509_p13, %p1713_p6 }
 0x1fb   : > { %p1507_p1 = pneg %p1506_p0 }
 0x1fd   : > { %1620 = dma.done.wait (%p1507_p1), %s1334_s19, 384  }
 0x1fe   : > { %1622 = vsyncadd (%p1507_p1), %s1334_s19, 4294966912  ;;  %p13_p2 = scmp.ge.s32.totalorder %s1696_s18, 4   ;;  %s1946_s12 = smov %s1629_s13 }
 0x1ff   : > { %s1947_s13 = smov %s1633_s14  ;;  %s1948_s14 = smov %s1707_s21 }
 0x200   : > { %s1949_s15 = smov %s1696_s18  ;;  %15 = sbr.rel (!%p13_p2) target bundleno = 3 (0x3), region = 75 }
 0x205   :  { %1339 = vsyncpa [#allocation3], 1 }
 0x206   :  { %1341 = vsyncpa [#allocation3 + $0x1], 1 }

</bundles_post_ra>
